<compile_context>
chip_gen: v7x
topology: tpu7x:2x2x1
jax: 0.10.0
libtpu: 0.0.40
codegen_flags: <defaults>
</compile_context>

<pallas_src>
import functools

import jax
import jax.numpy as jnp
from jax.experimental import pallas as pl
from jax.experimental.pallas import tpu as pltpu

LANE = 128


# --------------------------- in-kernel building blocks ---------------------------


def _gat_layer(mask, h_bf16, wfc, a_lr, bias, *, num_heads, head_dim):
    """DGL GATConv (bias=True, LeakyReLU 0.2, edge-softmax over in-edges), all in VMEM/vregs.

    mask:   (N, N) bool, mask[dst, src] = edge src -> dst
    h_bf16: (N, Fin)   bf16
    wfc:    (Fin, K*H) bf16, pre-transposed fc weight
    a_lr:   (K*H, 2K)  bf16, [block-diag attn_l | block-diag attn_r]
    bias:   (1, K*H)   f32
    returns (N, K*H) f32
    """
    feat = jnp.dot(h_bf16, wfc, preferred_element_type=jnp.float32)      # (N, K*H) f32
    feat_b = feat.astype(jnp.bfloat16)

    # one MXU matmul for the attention terms of every head (both sides)
    ee = jnp.dot(feat_b, a_lr, preferred_element_type=jnp.float32)       # (N, 2K)
    el = ee[:, :num_heads]                                               # (N, K) source terms
    er = ee[:, num_heads:2 * num_heads]                                  # (N, K) destination terms
    el_t = jnp.transpose(el)                                             # (K, N): one relayout/layer

    outs = []
    for k in range(num_heads):                                           # K tiny; unrolled
        e = er[:, k:k + 1] + el_t[k:k + 1, :]                            # (N_dst, N_src)
        e = jnp.where(e >= 0.0, e, 0.2 * e)                              # LeakyReLU(0.2)
        e = jnp.where(mask, e, -1e30)                                    # mask non-edges
        m = jnp.max(e, axis=1, keepdims=True)
        p = jnp.where(mask, jnp.exp(e - m), 0.0)
        # clamp denominator: isolated dst rows give alpha = 0 instead of NaN
        denom = jnp.maximum(jnp.sum(p, axis=1, keepdims=True), 1e-20)
        alpha = (p * pl.reciprocal(denom, approx=True)).astype(jnp.bfloat16)
        fk = feat_b[:, k * head_dim:(k + 1) * head_dim]                  # (N, H)
        outs.append(jnp.dot(alpha, fk, preferred_element_type=jnp.float32))

    out = outs[0] if num_heads == 1 else jnp.concatenate(outs, axis=1)
    return out + bias                                                    # single full-width bias add


def _fused_forward_kernel(adj_ref, feats_ref, w_ref, b_ref, out_ref, *,
                          num_heads, head_dim, num_nodes, w_layout, b_layout):
    """One graph per grid step: projection -> gat1 -> gat2 -> mean_nodes -> both MLP heads."""

    def w(name, full_lanes=False):
        off, rows, cols = w_layout[name]                                 # static Python ints
        return w_ref[off:off + rows, :] if full_lanes else w_ref[off:off + rows, :cols]

    def b(name, full_lanes=False):
        off, _, cols = b_layout[name]
        return b_ref[off:off + 1, :] if full_lanes else b_ref[off:off + 1, :cols]

    mask = adj_ref[...] > 0.0                                            # adj[dst, src]
    feats = feats_ref[...]                                               # (N, F_total) bf16

    # projection Linear(3D -> D): nearest-interp + concat folded into one (F_total, D) weight
    h0 = jnp.dot(feats, w("proj"), preferred_element_type=jnp.float32) + b("proj_b")

    # gat1: (N, D) -> (N, K*H)   (already "flattened(1)")
    h1 = _gat_layer(mask, h0.astype(jnp.bfloat16), w("wfc1"), w("alr1"), b("b1"),
                    num_heads=num_heads, head_dim=head_dim)
    # gat2: (N, K*H) -> (N, H)   (single head, squeeze(1))
    h2 = _gat_layer(mask, h1.astype(jnp.bfloat16), w("wfc2"), w("alr2"), b("b2"),
                    num_heads=1, head_dim=head_dim)

    # dgl.mean_nodes over this graph
    hg = jnp.sum(h2, axis=0, keepdims=True) * (1.0 / num_nodes)          # (1, H)

    h2_b = h2.astype(jnp.bfloat16)
    hg_b = hg.astype(jnp.bfloat16)

    # node_mlp / graph_mlp: Linear -> ReLU -> (Dropout = identity) -> Linear
    nh = jnp.maximum(jnp.dot(h2_b, w("nw1"), preferred_element_type=jnp.float32) + b("nb1"), 0.0)
    gh = jnp.maximum(jnp.dot(hg_b, w("gw1"), preferred_element_type=jnp.float32) + b("gb1"), 0.0)

    # final Linears use the full 128-lane zero-padded weights/biases so stores are lane-dense
    node_full = jnp.dot(nh.astype(jnp.bfloat16), w("nw2", full_lanes=True),
                        preferred_element_type=jnp.float32) + b("nb2", full_lanes=True)
    graph_full = jnp.dot(gh.astype(jnp.bfloat16), w("gw2", full_lanes=True),
                         preferred_element_type=jnp.float32) + b("gb2", full_lanes=True)

    out_ref[0:num_nodes, :] = node_full                                  # rows 0..N-1: node logits
    out_ref[num_nodes:num_nodes + 1, :] = graph_full                     # row N:       graph logits


# ------------------------ one-time host-side parameter prep ------------------------


def _fold_interp_weight(w_block, in_size, out_size):
    # nearest-interp along features: out[:, j] = in[:, floor(j * in_size / out_size)]
    # Fold that fixed column gather into the weight: W_eff[o, i] = sum_{j: idx[j]==i} W[o, j]
    idx = (jnp.arange(out_size) * in_size) // out_size
    onehot = (idx[:, None] == jnp.arange(in_size)[None, :]).astype(jnp.float32)  # (out, in)
    return jnp.dot(w_block, onehot)                                              # (D_out, in_size)


def _head_attn_matrix(a):
    # (K, H) attn vector per head -> (K*H, K) block-diagonal matrix so that
    # feat @ A  ==  per-head sum(feat_k * a_k)   computed on the MXU in one shot.
    num_heads, head_dim = a.shape
    eye = jnp.eye(num_heads, dtype=jnp.float32)
    return (a[:, :, None] * eye[:, None, :]).reshape(num_heads * head_dim, num_heads)


def _pack_slab(named_arrays, dtype, row_align):
    """Pack 2-D arrays into one (rows, 128) slab with sublane-tile-aligned row offsets.

    Returns (slab, {name: (row_offset, rows, cols)}); offsets are static Python ints.
    """
    parts, layout, off = [], {}, 0
    for name, a in named_arrays:
        r, c = a.shape
        layout[name] = (off, r, c)
        a = jnp.pad(a, ((0, 0), (0, LANE - c)))          # lane-pad to 128 with zeros
        pad_r = (-r) % row_align                         # keep next offset tile-aligned
        if pad_r:
            a = jnp.pad(a, ((0, pad_r), (0, 0)))
        parts.append(a)
        off += r + pad_r
    return jnp.concatenate(parts, axis=0).astype(dtype), layout


def prepare_params(params, *, d, f_rand, f_func, hidden, num_heads):
    """One-time prep (call ONCE, outside the jitted forward): fold interp+concat into the
    projection weight, build block-structured fused attention matrices, pre-transpose all
    Linear weights, and pack everything into two VMEM slabs (bf16 weights, f32 biases)."""
    w_r = _fold_interp_weight(params["proj_w"][:, 0:d], f_rand, d).T            # (f_rand, d)
    w_f = _fold_interp_weight(params["proj_w"][:, d:2 * d], f_func, d).T        # (f_func, d)
    w_e = params["proj_w"][:, 2 * d:3 * d].T                                    # (d, d)
    w_proj = jnp.concatenate([w_r, w_f, w_e], axis=0)                           # (F_total, d)

    a_lr1 = jnp.concatenate([_head_attn_matrix(params["gat1_al"]),
                             _head_attn_matrix(params["gat1_ar"])], axis=1)     # (K*H, 2K)
    a_lr2 = jnp.concatenate([_head_attn_matrix(params["gat2_al"]),
                             _head_attn_matrix(params["gat2_ar"])], axis=1)     # (H, 2)

    weights = [
        ("proj", w_proj),
        ("wfc1", params["gat1_wfc"].T), ("alr1", a_lr1),
        ("wfc2", params["gat2_wfc"].T), ("alr2", a_lr2),
        ("nw1", params["node_w1"].T), ("nw2", params["node_w2"].T),
        ("gw1", params["graph_w1"].T), ("gw2", params["graph_w2"].T),
    ]
    biases = [
        ("proj_b", params["proj_b"]),
        ("b1", params["gat1_bias"]), ("b2", params["gat2_bias"]),
        ("nb1", params["node_b1"]), ("nb2", params["node_b2"]),
        ("gb1", params["graph_b1"]), ("gb2", params["graph_b2"]),
    ]
    w_slab, w_layout = _pack_slab(weights, jnp.bfloat16, row_align=16)   # bf16 sublane tile = 16
    b_slab, b_layout = _pack_slab(biases, jnp.float32, row_align=8)      # f32 sublane tile = 8

    slabs = {"w_slab": w_slab, "b_slab": b_slab}
    meta = {"hidden": hidden, "num_heads": num_heads,
            "w_layout": w_layout, "b_layout": b_layout}
    return slabs, meta


# ----------------------------- jitted batched forward -----------------------------


def multi_task_gat_forward(slabs, adj, rand_feat, func_emb, emb, *, meta):
    """adj: (B,N,N); rand_feat: (B,N,Fr); func_emb: (B,N,Ff); emb: (B,N,D).

    Returns (node_logits (B,N,2), graph_logits (B,2))."""
    bsz, n = adj.shape[0], adj.shape[1]
    # per-call DATA prep only (weight prep lives in prepare_params): one concat + bf16 cast
    feats = jnp.concatenate([rand_feat, func_emb, emb], axis=-1).astype(jnp.bfloat16)
    f_total = feats.shape[-1]

    w_slab, b_slab = slabs["w_slab"], slabs["b_slab"]
    rows_out = ((n + 1 + 7) // 8) * 8                                    # sublane-aligned output

    kernel = functools.partial(
        _fused_forward_kernel,
        num_heads=meta["num_heads"], head_dim=meta["hidden"], num_nodes=n,
        w_layout=meta["w_layout"], b_layout=meta["b_layout"])

    out = pl.pallas_call(
        kernel,
        grid=(bsz,),
        out_shape=jax.ShapeDtypeStruct((bsz, rows_out, LANE), jnp.float32),
        in_specs=[
            pl.BlockSpec((None, n, n), lambda g: (g, 0, 0)),             # adjacency of graph g
            pl.BlockSpec((None, n, f_total), lambda g: (g, 0, 0)),       # features of graph g
            pl.BlockSpec(w_slab.shape, lambda g: (0, 0)),                # resident weight slab
            pl.BlockSpec(b_slab.shape, lambda g: (0, 0)),                # resident bias slab
        ],
        out_specs=pl.BlockSpec((None, rows_out, LANE), lambda g: (g, 0, 0)),
        compiler_params=pltpu.CompilerParams(dimension_semantics=("parallel",)),
    )(adj, feats, w_slab, b_slab)

    node_logits = out[:, :n, :2]                                         # (B, N, 2)
    graph_logits = out[:, n, :2]                                         # (B, 2)
    return node_logits, graph_logits


# ------------------------------ pure-JAX reference ------------------------------


def _nearest_interp_ref(x, out_size):
    in_size = x.shape[1]
    idx = (jnp.arange(out_size) * in_size) // out_size
    return x[:, idx]


def _gat_ref(adj, h, wfc, al, ar, bias, num_heads, head_dim):
    feat = h @ wfc.T
    mask = adj > 0.0
    outs = []
    for k in range(num_heads):
        fk = feat[:, k * head_dim:(k + 1) * head_dim]
        el = jnp.sum(fk * al[k], axis=1)
        er = jnp.sum(fk * ar[k], axis=1, keepdims=True)
        e = er + el[None, :]
        e = jnp.where(e >= 0.0, e, 0.2 * e)
        e = jnp.where(mask, e, -jnp.inf)
        p = jax.nn.softmax(e, axis=1)
        p = jnp.where(mask, p, 0.0)
        outs.append(p @ fk)
    return jnp.concatenate(outs, axis=1) + bias


def _forward_ref(params, adj, rand_feat, func_emb, emb, hidden, num_heads):
    d = emb.shape[1]
    h = jnp.concatenate([_nearest_interp_ref(rand_feat, d),
                         _nearest_interp_ref(func_emb, d), emb], axis=1)
    h = h @ params["proj_w"].T + params["proj_b"]
    h = _gat_ref(adj, h, params["gat1_wfc"], params["gat1_al"], params["gat1_ar"],
                 params["gat1_bias"], num_heads, hidden)
    h = _gat_ref(adj, h, params["gat2_wfc"], params["gat2_al"], params["gat2_ar"],
                 params["gat2_bias"], 1, hidden)
    hg = jnp.mean(h, axis=0, keepdims=True)
    nl = jnp.maximum(h @ params["node_w1"].T + params["node_b1"], 0.0) \
        @ params["node_w2"].T + params["node_b2"]
    gl = jnp.maximum(hg @ params["graph_w1"].T + params["graph_b1"], 0.0) \
        @ params["graph_w2"].T + params["graph_b2"]
    return nl, gl


# ----------------------------------- main -----------------------------------------

if __name__ == "__main__":
    B = 4           # graphs per kernel call (batched, parallel grid axis)
    N = 8           # nodes per graph
    F_RAND = 4      # _RANDFEAT width
    F_FUNC = 8      # _FUNC_EMB width
    D = 16          # embedding width (in_feats)
    H = 16          # hidden_feats
    K = 2           # num_heads

    key = jax.random.PRNGKey(0)
    ks = jax.random.split(key, 25)

    def rnd(k, shape, scale=0.1):
        return (scale * jax.random.normal(k, shape)).astype(jnp.float32)

    # node features per graph
    rand_feat = rnd(ks[0], (B, N, F_RAND), 1.0)
    func_emb = rnd(ks[1], (B, N, F_FUNC), 1.0)
    emb = rnd(ks[2], (B, N, D), 1.0)

    # per-graph random directed adjacency with forced self-loops; adj[g, dst, src]
    adj = (jax.random.uniform(ks[21], (B, N, N)) < 0.3).astype(jnp.float32)
    adj = jnp.maximum(adj, jnp.eye(N, dtype=jnp.float32)[None])

    params = {
        # forward-created Linear(3D -> D)
        "proj_w": rnd(ks[3], (D, 3 * D)), "proj_b": rnd(ks[4], (1, D)),
        # gat1: GATConv(D, H, K)
        "gat1_wfc": rnd(ks[5], (K * H, D)),
        "gat1_al": rnd(ks[6], (K, H)), "gat1_ar": rnd(ks[7], (K, H)),
        "gat1_bias": rnd(ks[8], (1, K * H)),
        # gat2: GATConv(K*H, H, 1)
        "gat2_wfc": rnd(ks[9], (H, K * H)),
        "gat2_al": rnd(ks[10], (1, H)), "gat2_ar": rnd(ks[11], (1, H)),
        "gat2_bias": rnd(ks[12], (1, H)),
        # node_mlp: Linear(H,H) -> ReLU -> Dropout -> Linear(H,2)
        "node_w1": rnd(ks[13], (H, H)), "node_b1": rnd(ks[14], (1, H)),
        "node_w2": rnd(ks[15], (2, H)), "node_b2": rnd(ks[16], (1, 2)),
        # graph_mlp: Linear(H,H) -> ReLU -> Dropout -> Linear(H,2)
        "graph_w1": rnd(ks[17], (H, H)), "graph_b1": rnd(ks[18], (1, H)),
        "graph_w2": rnd(ks[19], (2, H)), "graph_b2": rnd(ks[20], (1, 2)),
    }

    # one-time weight prep (NOT in the jitted per-call path)
    slabs, meta = prepare_params(params, d=D, f_rand=F_RAND, f_func=F_FUNC,
                                 hidden=H, num_heads=K)

    fwd = jax.jit(functools.partial(multi_task_gat_forward, meta=meta))
    node_logits, graph_logits = fwd(slabs, adj, rand_feat, func_emb, emb)
    jax.block_until_ready((node_logits, graph_logits))

    # sanity vs pure-JAX reference (tolerance covers bf16 MXU passes + approx reciprocal)
    ref_nodes, ref_graphs = [], []
    for g in range(B):
        nl, gl = _forward_ref(params, adj[g], rand_feat[g], func_emb[g], emb[g], H, K)
        ref_nodes.append(nl)
        ref_graphs.append(gl[0])
    ref_node = jnp.stack(ref_nodes)
    ref_graph = jnp.stack(ref_graphs)

    assert node_logits.shape == (B, N, 2) and graph_logits.shape == (B, 2)
    assert bool(jnp.all(jnp.isfinite(node_logits))) and bool(jnp.all(jnp.isfinite(graph_logits)))
    assert bool(jnp.allclose(node_logits, ref_node, rtol=5e-2, atol=1e-2)), "node logits mismatch"
    assert bool(jnp.allclose(graph_logits, ref_graph, rtol=5e-2, atol=1e-2)), "graph logits mismatch"

    print("KERNEL_OK")
</pallas_src>

<mosaic_0001>
module attributes {stable_mosaic.version = 11 : i64} {
  func.func @_fused_forward_kernel(%arg0: i32, %arg1: memref<1x8x8xf32, #tpu.memory_space<vmem>>, %arg2: memref<1x8x28xbf16, #tpu.memory_space<vmem>>, %arg3: memref<192x128xbf16, #tpu.memory_space<vmem>>, %arg4: memref<56x128xf32, #tpu.memory_space<vmem>>, %arg5: memref<1x16x128xf32, #tpu.memory_space<vmem>>) attributes {dimension_semantics = [#tpu.dimension_semantics<parallel>], iteration_bounds = array<i64: 4>, scalar_prefetch = 0 : i64, scratch_operands = 0 : i64, tpu.core_type = #tpu.core_type<tc>, window_params = [{transform_indices = @transform_0, window_bounds = array<i64: 1, 8, 8>}, {transform_indices = @transform_1, window_bounds = array<i64: 1, 8, 28>}, {pipeline_mode = #tpu.pipeline_mode<synchronous>, transform_indices = @transform_2, window_bounds = array<i64: 192, 128>}, {pipeline_mode = #tpu.pipeline_mode<synchronous>, transform_indices = @transform_3, window_bounds = array<i64: 56, 128>}, {transform_indices = @transform_4, window_bounds = array<i64: 1, 16, 128>}]} {
    %c0 = arith.constant 0 : index
    %c0_0 = arith.constant 0 : index
    %c0_1 = arith.constant 0 : index
    %0 = vector.load %arg1[%c0, %c0_0, %c0_1] : memref<1x8x8xf32, #tpu.memory_space<vmem>>, vector<1x8x8xf32>
    %1 = vector.shape_cast %0 : vector<1x8x8xf32> to vector<8x8xf32>
    %cst = arith.constant 0.000000e+00 : f32
    %2 = vector.broadcast %cst : f32 to vector<8x8xf32>
    %3 = arith.cmpf ogt, %1, %2 : vector<8x8xf32>
    %c0_2 = arith.constant 0 : index
    %c0_3 = arith.constant 0 : index
    %c0_4 = arith.constant 0 : index
    %4 = vector.load %arg2[%c0_2, %c0_3, %c0_4] : memref<1x8x28xbf16, #tpu.memory_space<vmem>>, vector<1x8x28xbf16>
    %5 = vector.shape_cast %4 : vector<1x8x28xbf16> to vector<8x28xbf16>
    %c0_5 = arith.constant 0 : index
    %c0_6 = arith.constant 0 : index
    %6 = vector.load %arg3[%c0_5, %c0_6] : memref<192x128xbf16, #tpu.memory_space<vmem>>, vector<28x16xbf16>
    %cst_7 = arith.constant dense<0.000000e+00> : vector<8x16xf32>
    %7 = tpu.matmul %5, %6, %cst_7 {dimension_numbers = #tpu.dot_dimension_numbers<[1], [0], [0], [1], [0, 0, 1, 1], [], []>} : vector<8x28xbf16>, vector<28x16xbf16>, vector<8x16xf32> -> vector<8x16xf32>
    %c0_8 = arith.constant 0 : index
    %c0_9 = arith.constant 0 : index
    %8 = vector.load %arg4[%c0_8, %c0_9] : memref<56x128xf32, #tpu.memory_space<vmem>>, vector<1x16xf32>
    %9 = vector.broadcast %8 : vector<1x16xf32> to vector<8x16xf32>
    %10 = arith.addf %7, %9 : vector<8x16xf32>
    %11 = arith.truncf %10 : vector<8x16xf32> to vector<8x16xbf16>
    %c32 = arith.constant 32 : index
    %c0_10 = arith.constant 0 : index
    %12 = vector.load %arg3[%c32, %c0_10] : memref<192x128xbf16, #tpu.memory_space<vmem>>, vector<16x32xbf16>
    %c48 = arith.constant 48 : index
    %c0_11 = arith.constant 0 : index
    %13 = vector.load %arg3[%c48, %c0_11] : memref<192x128xbf16, #tpu.memory_space<vmem>>, vector<32x4xbf16>
    %c8 = arith.constant 8 : index
    %c0_12 = arith.constant 0 : index
    %14 = vector.load %arg4[%c8, %c0_12] : memref<56x128xf32, #tpu.memory_space<vmem>>, vector<1x32xf32>
    %cst_13 = arith.constant dense<0.000000e+00> : vector<8x32xf32>
    %15 = tpu.matmul %11, %12, %cst_13 {dimension_numbers = #tpu.dot_dimension_numbers<[1], [0], [0], [1], [0, 0, 1, 1], [], []>} : vector<8x16xbf16>, vector<16x32xbf16>, vector<8x32xf32> -> vector<8x32xf32>
    %16 = arith.truncf %15 : vector<8x32xf32> to vector<8x32xbf16>
    %cst_14 = arith.constant dense<0.000000e+00> : vector<8x4xf32>
    %17 = tpu.matmul %16, %13, %cst_14 {dimension_numbers = #tpu.dot_dimension_numbers<[1], [0], [0], [1], [0, 0, 1, 1], [], []>} : vector<8x32xbf16>, vector<32x4xbf16>, vector<8x4xf32> -> vector<8x4xf32>
    %18 = vector.extract_strided_slice %17 {offsets = [0, 0], sizes = [8, 2], strides = [1, 1]} : vector<8x4xf32> to vector<8x2xf32>
    %19 = vector.extract_strided_slice %17 {offsets = [0, 2], sizes = [8, 2], strides = [1, 1]} : vector<8x4xf32> to vector<8x2xf32>
    %20 = tpu.transpose %18, [1, 0] : vector<8x2xf32> -> vector<2x8xf32>
    %21 = vector.extract_strided_slice %19 {offsets = [0, 0], sizes = [8, 1], strides = [1, 1]} : vector<8x2xf32> to vector<8x1xf32>
    %22 = vector.extract_strided_slice %20 {offsets = [0, 0], sizes = [1, 8], strides = [1, 1]} : vector<2x8xf32> to vector<1x8xf32>
    %23 = vector.broadcast %21 : vector<8x1xf32> to vector<8x8xf32>
    %24 = vector.broadcast %22 : vector<1x8xf32> to vector<8x8xf32>
    %25 = arith.addf %23, %24 : vector<8x8xf32>
    %cst_15 = arith.constant 0.000000e+00 : f32
    %26 = vector.broadcast %cst_15 : f32 to vector<8x8xf32>
    %27 = arith.cmpf oge, %25, %26 : vector<8x8xf32>
    %cst_16 = arith.constant 2.000000e-01 : f32
    %28 = vector.broadcast %cst_16 : f32 to vector<8x8xf32>
    %29 = arith.mulf %28, %25 : vector<8x8xf32>
    %30 = arith.select %27, %25, %29 : vector<8x8xi1>, vector<8x8xf32>
    %cst_17 = arith.constant -1.000000e+30 : f32
    %31 = vector.broadcast %cst_17 : f32 to vector<8x8xf32>
    %32 = arith.select %3, %30, %31 : vector<8x8xi1>, vector<8x8xf32>
    %cst_18 = arith.constant dense<0xFF800000> : vector<8xf32>
    %33 = vector.multi_reduction <maximumf>, %32, %cst_18 [1] : vector<8x8xf32> to vector<8xf32>
    %34 = vector.shape_cast %33 : vector<8xf32> to vector<8x1xf32>
    %35 = vector.broadcast %34 : vector<8x1xf32> to vector<8x8xf32>
    %36 = arith.subf %32, %35 : vector<8x8xf32>
    %37 = math.exp %36 : vector<8x8xf32>
    %cst_19 = arith.constant 0.000000e+00 : f32
    %38 = vector.broadcast %cst_19 : f32 to vector<8x8xf32>
    %39 = arith.select %3, %37, %38 : vector<8x8xi1>, vector<8x8xf32>
    %cst_20 = arith.constant dense<0.000000e+00> : vector<8xf32>
    %40 = vector.multi_reduction <add>, %39, %cst_20 [1] : vector<8x8xf32> to vector<8xf32>
    %41 = vector.shape_cast %40 : vector<8xf32> to vector<8x1xf32>
    %cst_21 = arith.constant 9.99999968E-21 : f32
    %42 = vector.broadcast %cst_21 : f32 to vector<8x1xf32>
    %43 = arith.maximumf %41, %42 : vector<8x1xf32>
    %44 = tpu.reciprocal %43 {approx = true} : vector<8x1xf32> -> vector<8x1xf32>
    %45 = vector.broadcast %44 : vector<8x1xf32> to vector<8x8xf32>
    %46 = arith.mulf %39, %45 : vector<8x8xf32>
    %47 = arith.truncf %46 : vector<8x8xf32> to vector<8x8xbf16>
    %48 = vector.extract_strided_slice %16 {offsets = [0, 0], sizes = [8, 16], strides = [1, 1]} : vector<8x32xbf16> to vector<8x16xbf16>
    %cst_22 = arith.constant dense<0.000000e+00> : vector<8x16xf32>
    %49 = tpu.matmul %47, %48, %cst_22 {dimension_numbers = #tpu.dot_dimension_numbers<[1], [0], [0], [1], [0, 0, 1, 1], [], []>} : vector<8x8xbf16>, vector<8x16xbf16>, vector<8x16xf32> -> vector<8x16xf32>
    %50 = vector.extract_strided_slice %19 {offsets = [0, 1], sizes = [8, 1], strides = [1, 1]} : vector<8x2xf32> to vector<8x1xf32>
    %51 = vector.extract_strided_slice %20 {offsets = [1, 0], sizes = [1, 8], strides = [1, 1]} : vector<2x8xf32> to vector<1x8xf32>
    %52 = vector.broadcast %50 : vector<8x1xf32> to vector<8x8xf32>
    %53 = vector.broadcast %51 : vector<1x8xf32> to vector<8x8xf32>
    %54 = arith.addf %52, %53 : vector<8x8xf32>
    %cst_23 = arith.constant 0.000000e+00 : f32
    %55 = vector.broadcast %cst_23 : f32 to vector<8x8xf32>
    %56 = arith.cmpf oge, %54, %55 : vector<8x8xf32>
    %cst_24 = arith.constant 2.000000e-01 : f32
    %57 = vector.broadcast %cst_24 : f32 to vector<8x8xf32>
    %58 = arith.mulf %57, %54 : vector<8x8xf32>
    %59 = arith.select %56, %54, %58 : vector<8x8xi1>, vector<8x8xf32>
    %cst_25 = arith.constant -1.000000e+30 : f32
    %60 = vector.broadcast %cst_25 : f32 to vector<8x8xf32>
    %61 = arith.select %3, %59, %60 : vector<8x8xi1>, vector<8x8xf32>
    %cst_26 = arith.constant dense<0xFF800000> : vector<8xf32>
    %62 = vector.multi_reduction <maximumf>, %61, %cst_26 [1] : vector<8x8xf32> to vector<8xf32>
    %63 = vector.shape_cast %62 : vector<8xf32> to vector<8x1xf32>
    %64 = vector.broadcast %63 : vector<8x1xf32> to vector<8x8xf32>
    %65 = arith.subf %61, %64 : vector<8x8xf32>
    %66 = math.exp %65 : vector<8x8xf32>
    %cst_27 = arith.constant 0.000000e+00 : f32
    %67 = vector.broadcast %cst_27 : f32 to vector<8x8xf32>
    %68 = arith.select %3, %66, %67 : vector<8x8xi1>, vector<8x8xf32>
    %cst_28 = arith.constant dense<0.000000e+00> : vector<8xf32>
    %69 = vector.multi_reduction <add>, %68, %cst_28 [1] : vector<8x8xf32> to vector<8xf32>
    %70 = vector.shape_cast %69 : vector<8xf32> to vector<8x1xf32>
    %cst_29 = arith.constant 9.99999968E-21 : f32
    %71 = vector.broadcast %cst_29 : f32 to vector<8x1xf32>
    %72 = arith.maximumf %70, %71 : vector<8x1xf32>
    %73 = tpu.reciprocal %72 {approx = true} : vector<8x1xf32> -> vector<8x1xf32>
    %74 = vector.broadcast %73 : vector<8x1xf32> to vector<8x8xf32>
    %75 = arith.mulf %68, %74 : vector<8x8xf32>
    %76 = arith.truncf %75 : vector<8x8xf32> to vector<8x8xbf16>
    %77 = vector.extract_strided_slice %16 {offsets = [0, 16], sizes = [8, 16], strides = [1, 1]} : vector<8x32xbf16> to vector<8x16xbf16>
    %cst_30 = arith.constant dense<0.000000e+00> : vector<8x16xf32>
    %78 = tpu.matmul %76, %77, %cst_30 {dimension_numbers = #tpu.dot_dimension_numbers<[1], [0], [0], [1], [0, 0, 1, 1], [], []>} : vector<8x8xbf16>, vector<8x16xbf16>, vector<8x16xf32> -> vector<8x16xf32>
    %79 = tpu.concatenate %49, %78 in 1 : vector<8x16xf32>, vector<8x16xf32> -> vector<8x32xf32>
    %80 = vector.broadcast %14 : vector<1x32xf32> to vector<8x32xf32>
    %81 = arith.addf %79, %80 : vector<8x32xf32>
    %82 = arith.truncf %81 : vector<8x32xf32> to vector<8x32xbf16>
    %c80 = arith.constant 80 : index
    %c0_31 = arith.constant 0 : index
    %83 = vector.load %arg3[%c80, %c0_31] : memref<192x128xbf16, #tpu.memory_space<vmem>>, vector<32x16xbf16>
    %c112 = arith.constant 112 : index
    %c0_32 = arith.constant 0 : index
    %84 = vector.load %arg3[%c112, %c0_32] : memref<192x128xbf16, #tpu.memory_space<vmem>>, vector<16x2xbf16>
    %c16 = arith.constant 16 : index
    %c0_33 = arith.constant 0 : index
    %85 = vector.load %arg4[%c16, %c0_33] : memref<56x128xf32, #tpu.memory_space<vmem>>, vector<1x16xf32>
    %cst_34 = arith.constant dense<0.000000e+00> : vector<8x16xf32>
    %86 = tpu.matmul %82, %83, %cst_34 {dimension_numbers = #tpu.dot_dimension_numbers<[1], [0], [0], [1], [0, 0, 1, 1], [], []>} : vector<8x32xbf16>, vector<32x16xbf16>, vector<8x16xf32> -> vector<8x16xf32>
    %87 = arith.truncf %86 : vector<8x16xf32> to vector<8x16xbf16>
    %cst_35 = arith.constant dense<0.000000e+00> : vector<8x2xf32>
    %88 = tpu.matmul %87, %84, %cst_35 {dimension_numbers = #tpu.dot_dimension_numbers<[1], [0], [0], [1], [0, 0, 1, 1], [], []>} : vector<8x16xbf16>, vector<16x2xbf16>, vector<8x2xf32> -> vector<8x2xf32>
    %89 = vector.extract_strided_slice %88 {offsets = [0, 0], sizes = [8, 1], strides = [1, 1]} : vector<8x2xf32> to vector<8x1xf32>
    %90 = vector.extract_strided_slice %88 {offsets = [0, 1], sizes = [8, 1], strides = [1, 1]} : vector<8x2xf32> to vector<8x1xf32>
    %91 = tpu.transpose %89, [1, 0] : vector<8x1xf32> -> vector<1x8xf32>
    %92 = vector.broadcast %90 : vector<8x1xf32> to vector<8x8xf32>
    %93 = vector.broadcast %91 : vector<1x8xf32> to vector<8x8xf32>
    %94 = arith.addf %92, %93 : vector<8x8xf32>
    %cst_36 = arith.constant 0.000000e+00 : f32
    %95 = vector.broadcast %cst_36 : f32 to vector<8x8xf32>
    %96 = arith.cmpf oge, %94, %95 : vector<8x8xf32>
    %cst_37 = arith.constant 2.000000e-01 : f32
    %97 = vector.broadcast %cst_37 : f32 to vector<8x8xf32>
    %98 = arith.mulf %97, %94 : vector<8x8xf32>
    %99 = arith.select %96, %94, %98 : vector<8x8xi1>, vector<8x8xf32>
    %cst_38 = arith.constant -1.000000e+30 : f32
    %100 = vector.broadcast %cst_38 : f32 to vector<8x8xf32>
    %101 = arith.select %3, %99, %100 : vector<8x8xi1>, vector<8x8xf32>
    %cst_39 = arith.constant dense<0xFF800000> : vector<8xf32>
    %102 = vector.multi_reduction <maximumf>, %101, %cst_39 [1] : vector<8x8xf32> to vector<8xf32>
    %103 = vector.shape_cast %102 : vector<8xf32> to vector<8x1xf32>
    %104 = vector.broadcast %103 : vector<8x1xf32> to vector<8x8xf32>
    %105 = arith.subf %101, %104 : vector<8x8xf32>
    %106 = math.exp %105 : vector<8x8xf32>
    %cst_40 = arith.constant 0.000000e+00 : f32
    %107 = vector.broadcast %cst_40 : f32 to vector<8x8xf32>
    %108 = arith.select %3, %106, %107 : vector<8x8xi1>, vector<8x8xf32>
    %cst_41 = arith.constant dense<0.000000e+00> : vector<8xf32>
    %109 = vector.multi_reduction <add>, %108, %cst_41 [1] : vector<8x8xf32> to vector<8xf32>
    %110 = vector.shape_cast %109 : vector<8xf32> to vector<8x1xf32>
    %cst_42 = arith.constant 9.99999968E-21 : f32
    %111 = vector.broadcast %cst_42 : f32 to vector<8x1xf32>
    %112 = arith.maximumf %110, %111 : vector<8x1xf32>
    %113 = tpu.reciprocal %112 {approx = true} : vector<8x1xf32> -> vector<8x1xf32>
    %114 = vector.broadcast %113 : vector<8x1xf32> to vector<8x8xf32>
    %115 = arith.mulf %108, %114 : vector<8x8xf32>
    %116 = arith.truncf %115 : vector<8x8xf32> to vector<8x8xbf16>
    %cst_43 = arith.constant dense<0.000000e+00> : vector<8x16xf32>
    %117 = tpu.matmul %116, %87, %cst_43 {dimension_numbers = #tpu.dot_dimension_numbers<[1], [0], [0], [1], [0, 0, 1, 1], [], []>} : vector<8x8xbf16>, vector<8x16xbf16>, vector<8x16xf32> -> vector<8x16xf32>
    %118 = vector.broadcast %85 : vector<1x16xf32> to vector<8x16xf32>
    %119 = arith.addf %117, %118 : vector<8x16xf32>
    %cst_44 = arith.constant dense<0.000000e+00> : vector<16xf32>
    %120 = vector.multi_reduction <add>, %119, %cst_44 [0] : vector<8x16xf32> to vector<16xf32>
    %121 = vector.shape_cast %120 : vector<16xf32> to vector<1x16xf32>
    %cst_45 = arith.constant 1.250000e-01 : f32
    %122 = vector.broadcast %cst_45 : f32 to vector<1x16xf32>
    %123 = arith.mulf %121, %122 : vector<1x16xf32>
    %124 = arith.truncf %119 : vector<8x16xf32> to vector<8x16xbf16>
    %125 = arith.truncf %123 : vector<1x16xf32> to vector<1x16xbf16>
    %c128 = arith.constant 128 : index
    %c0_46 = arith.constant 0 : index
    %126 = vector.load %arg3[%c128, %c0_46] : memref<192x128xbf16, #tpu.memory_space<vmem>>, vector<16x16xbf16>
    %cst_47 = arith.constant dense<0.000000e+00> : vector<8x16xf32>
    %127 = tpu.matmul %124, %126, %cst_47 {dimension_numbers = #tpu.dot_dimension_numbers<[1], [0], [0], [1], [0, 0, 1, 1], [], []>} : vector<8x16xbf16>, vector<16x16xbf16>, vector<8x16xf32> -> vector<8x16xf32>
    %c24 = arith.constant 24 : index
    %c0_48 = arith.constant 0 : index
    %128 = vector.load %arg4[%c24, %c0_48] : memref<56x128xf32, #tpu.memory_space<vmem>>, vector<1x16xf32>
    %129 = vector.broadcast %128 : vector<1x16xf32> to vector<8x16xf32>
    %130 = arith.addf %127, %129 : vector<8x16xf32>
    %cst_49 = arith.constant 0.000000e+00 : f32
    %131 = vector.broadcast %cst_49 : f32 to vector<8x16xf32>
    %132 = arith.maximumf %130, %131 : vector<8x16xf32>
    %c160 = arith.constant 160 : index
    %c0_50 = arith.constant 0 : index
    %133 = vector.load %arg3[%c160, %c0_50] : memref<192x128xbf16, #tpu.memory_space<vmem>>, vector<16x16xbf16>
    %cst_51 = arith.constant dense<0.000000e+00> : vector<1x16xf32>
    %134 = tpu.matmul %125, %133, %cst_51 {dimension_numbers = #tpu.dot_dimension_numbers<[1], [0], [0], [1], [0, 0, 1, 1], [], []>} : vector<1x16xbf16>, vector<16x16xbf16>, vector<1x16xf32> -> vector<1x16xf32>
    %c40 = arith.constant 40 : index
    %c0_52 = arith.constant 0 : index
    %135 = vector.load %arg4[%c40, %c0_52] : memref<56x128xf32, #tpu.memory_space<vmem>>, vector<1x16xf32>
    %136 = arith.addf %134, %135 : vector<1x16xf32>
    %cst_53 = arith.constant 0.000000e+00 : f32
    %137 = vector.broadcast %cst_53 : f32 to vector<1x16xf32>
    %138 = arith.maximumf %136, %137 : vector<1x16xf32>
    %139 = arith.truncf %132 : vector<8x16xf32> to vector<8x16xbf16>
    %c144 = arith.constant 144 : index
    %c0_54 = arith.constant 0 : index
    %140 = vector.load %arg3[%c144, %c0_54] : memref<192x128xbf16, #tpu.memory_space<vmem>>, vector<16x128xbf16>
    %cst_55 = arith.constant dense<0.000000e+00> : vector<8x128xf32>
    %141 = tpu.matmul %139, %140, %cst_55 {dimension_numbers = #tpu.dot_dimension_numbers<[1], [0], [0], [1], [0, 0, 1, 1], [], []>} : vector<8x16xbf16>, vector<16x128xbf16>, vector<8x128xf32> -> vector<8x128xf32>
    %c32_56 = arith.constant 32 : index
    %c0_57 = arith.constant 0 : index
    %142 = vector.load %arg4[%c32_56, %c0_57] : memref<56x128xf32, #tpu.memory_space<vmem>>, vector<1x128xf32>
    %143 = vector.broadcast %142 : vector<1x128xf32> to vector<8x128xf32>
    %144 = arith.addf %141, %143 : vector<8x128xf32>
    %145 = arith.truncf %138 : vector<1x16xf32> to vector<1x16xbf16>
    %c176 = arith.constant 176 : index
    %c0_58 = arith.constant 0 : index
    %146 = vector.load %arg3[%c176, %c0_58] : memref<192x128xbf16, #tpu.memory_space<vmem>>, vector<16x128xbf16>
    %cst_59 = arith.constant dense<0.000000e+00> : vector<1x128xf32>
    %147 = tpu.matmul %145, %146, %cst_59 {dimension_numbers = #tpu.dot_dimension_numbers<[1], [0], [0], [1], [0, 0, 1, 1], [], []>} : vector<1x16xbf16>, vector<16x128xbf16>, vector<1x128xf32> -> vector<1x128xf32>
    %c48_60 = arith.constant 48 : index
    %c0_61 = arith.constant 0 : index
    %148 = vector.load %arg4[%c48_60, %c0_61] : memref<56x128xf32, #tpu.memory_space<vmem>>, vector<1x128xf32>
    %149 = arith.addf %147, %148 : vector<1x128xf32>
    %c0_62 = arith.constant 0 : index
    %c0_63 = arith.constant 0 : index
    %c0_64 = arith.constant 0 : index
    %150 = vector.load %arg5[%c0_62, %c0_63, %c0_64] : memref<1x16x128xf32, #tpu.memory_space<vmem>>, vector<1x8x128xf32>
    %151 = vector.shape_cast %150 : vector<1x8x128xf32> to vector<8x128xf32>
    %152 = vector.shape_cast %144 : vector<8x128xf32> to vector<1x8x128xf32>
    tpu.vector_store %arg5[%c0_62, %c0_63, %c0_64], %152 {strides = array<i32>} : memref<1x16x128xf32, #tpu.memory_space<vmem>>, vector<1x8x128xf32>,
    %c0_65 = arith.constant 0 : index
    %c8_66 = arith.constant 8 : index
    %c0_67 = arith.constant 0 : index
    %153 = vector.load %arg5[%c0_65, %c8_66, %c0_67] : memref<1x16x128xf32, #tpu.memory_space<vmem>>, vector<1x1x128xf32>
    %154 = vector.shape_cast %153 : vector<1x1x128xf32> to vector<1x128xf32>
    %155 = vector.shape_cast %149 : vector<1x128xf32> to vector<1x1x128xf32>
    tpu.vector_store %arg5[%c0_65, %c8_66, %c0_67], %155 {strides = array<i32>} : memref<1x16x128xf32, #tpu.memory_space<vmem>>, vector<1x1x128xf32>,
    return
  }
  func.func @transform_0(%arg0: i32) -> (i32, i32, i32) {
    %c0_i32 = arith.constant 0 : i32
    %c0_i32_0 = arith.constant 0 : i32
    %c0_i32_1 = arith.constant 0 : i32
    return %arg0, %c0_i32, %c0_i32_0 : i32, i32, i32
  }
  func.func @transform_1(%arg0: i32) -> (i32, i32, i32) {
    %c0_i32 = arith.constant 0 : i32
    %c0_i32_0 = arith.constant 0 : i32
    %c0_i32_1 = arith.constant 0 : i32
    return %arg0, %c0_i32, %c0_i32_0 : i32, i32, i32
  }
  func.func @transform_2(%arg0: i32) -> (i32, i32) {
    %c0_i32 = arith.constant 0 : i32
    %c0_i32_0 = arith.constant 0 : i32
    %c0_i32_1 = arith.constant 0 : i32
    return %c0_i32, %c0_i32_0 : i32, i32
  }
  func.func @transform_3(%arg0: i32) -> (i32, i32) {
    %c0_i32 = arith.constant 0 : i32
    %c0_i32_0 = arith.constant 0 : i32
    %c0_i32_1 = arith.constant 0 : i32
    return %c0_i32, %c0_i32_0 : i32, i32
  }
  func.func @transform_4(%arg0: i32) -> (i32, i32, i32) {
    %c0_i32 = arith.constant 0 : i32
    %c0_i32_0 = arith.constant 0 : i32
    %c0_i32_1 = arith.constant 0 : i32
    return %arg0, %c0_i32, %c0_i32_0 : i32, i32, i32
  }
}

</mosaic_0001>

<bundles_post_ra>
// kernel: multi_task_gat_forward.1
= control target key start
LH: loop header
LB: loop body
LE: loop exit
PB: predicated region body
PF: predicated region fallthrough
CT: control target
= control target key end

     0   :  { %s1342_s15 = smov 0   ;;  %s1508_s0 = inlined_call_operand.vmem [shape: f32[4,8,8], index: 0, kind: input, shape index: {}]   ;;  %s1509_s1 = inlined_call_operand.vmem [shape: bf16[4,8,28], index: 1, kind: input, shape index: {}]   ;;  %s1510_s2 = inlined_call_operand.vmem [shape: bf16[192,128], index: 2, kind: input, shape index: {}]   ;;  %s1511_s3 = inlined_call_operand.vmem [shape: f32[56,128], index: 3, kind: input, shape index: {}]   ;;  %s1512_s4 = inlined_call_operand.vmem [shape: f32[4,16,128], index: 4, kind: output, shape index: {}]  }
   0x1 LB: > { %s1113_s16 = sadd.s32 4294967295, %s1308_s15   ;;  %p1117_p0 = scmp.ge.s32.totalorder %s1308_s15, 1  ;;  %s1308_s15 = sphi %s1342_s15, %s14_s15  }
   0x2   : > { %p170_p1 = scmp.lt.s32.totalorder %s1308_s15, 5 }
   0x4   : > { %p171_p2 = pnand %p1117_p0, %p170_p1 }
   0x5   : > { %v1278_v0 = vld [vmem:[%s1510_s2] sm:$0xff] (!%p171_p2)   ;;  %v1310_v1 = vmov (!%p171_p2), 0.0   ;;  %v1279_v2 = vld [vmem:[%s1510_s2 + $0x8] sm:$0x3f] (!%p171_p2)   ;;  %vm240_vm0 = vcmask (!%p171_p2), 1045504   ;;  %p199_p3 = scmp.lt.s32.totalorder (!%p171_p2), %s1113_s16, 3  ;;  %v436_v27 = vlaneseq (!%p171_p2) }
   0x6   : > { %174 = sbr.rel (%p171_p2) target bundleno = 3023 (0xbcf), region = 36  ;;  %1181 = vmatprep.subr.bf16.mxu0 (!%p171_p2), %v1310_v1  ;;  %1189 = vmatprep.subr.bf16.mxu1 (!%p171_p2), %v1310_v1  ;;  %v242_v3 = vsel (!%p171_p2), %vm240_vm0, %v1279_v2, 0  ;;  %vm1311_vm1 = vmmov (!%p171_p2), 0   ;;  %vm236_vm2 = vcmask (!%p171_p2), 228352   ;;  %v1280_v5 = vld [vmem:[%s1510_s2 + $0x10] sm:$0xff] (!%p171_p2)   ;;  %vm298_vm3 = vcmask (!%p171_p2), 130048  }
   0x7   : > { %1182 = vmatpush3.bf16.msra.mxu0 (!%p171_p2), %v1278_v0  ;;  %1185 = vmatprep.mubr.msk.bf16.mxu0 (!%p171_p2), %vm1311_vm1, %v1310_v1  ;;  %v1122_v6 = vld [vmem:[%s1511_s3] ss:$0 sm:$0xff] (!%p171_p2)  ;;  %v1281_v11 = vld [vmem:[%s1510_s2 + $0x18] sm:$0xff] (!%p171_p2)   ;;  %v1312_v15 = vmov (!%p171_p2), 3   ;;  %v1313_v16 = vmov (!%p171_p2), 2   ;;  %vm355_vm4 = vcmask (!%p171_p2), 261120  }
   0x8   : > { %1183 = vmatprep.subr.bf16.mxu0 (!%p171_p2), %v1310_v1  ;;  %1191 = vmatprep.mubr.msk.bf16.mxu1 (!%p171_p2), %vm1311_vm1, %v1310_v1  ;;  %v1282_v14 = vld [vmem:[%s1510_s2 + $0x20] sm:$0xff] (!%p171_p2)   ;;  %vm463_vm5 = vcmask (!%p171_p2), 1043456   ;;  %v1395_v28 = vshrl.u32 (!%p171_p2), %v436_v27, 7  ;;  %vm445_vm9 = vcmask (!%p171_p2), 64512   ;;  %s1314_s11 = smov (!%p171_p2), 112   ;;  %s1315_s20 = smov (!%p171_p2), 16  }
   0x9   : > { %1190 = vmatpush3.bf16.msra.mxu1 (!%p171_p2), %v1280_v5  ;;  %1274 = vset.pattern.permute.xlu0 (!%p171_p2), %v1312_v15 }
   0xa   : > { %1195 = vmatprep.subr.bf16.mxu1 (!%p171_p2), %v1310_v1  ;;  %1275 = vset.pattern.permute.xlu1 (!%p171_p2), %v1313_v16  ;;  %v438_v30 = vsub.s32 (!%p171_p2), 0, %v1395_v28  ;;  %v512_v31 = vsub.s32 (!%p171_p2), 1, %v1395_v28 }
   0xb   : > { %1184 = vmatpush3.bf16.msra.mxu0 (!%p171_p2), %v242_v3 }
   0xc   : > { %1203 = vmatprep.subr.bf16.mxu0 (!%p171_p2), %v1310_v1 }
   0xd   : > { %s1514_s16 = smov (!%p199_p3, %s1113_s16), 3 }
   0xe   : > { %s1119_s21 = sshll.u32 %s1514_s16, 2  ;;  %s1118_s7 = sshll.u32 %s1514_s16, 3 }
   0xf   : > { %s206_s24 = scalar_lea.vmem %s1509_s1, %s1119_s21  ;;  %s202_s10 = scalar_lea.vmem %s1508_s0, %s1118_s7 }
  0x10   : > { %v215_v4 = vld [vmem:[%s206_s24] sm:$0xf] }
  0x11   : > { %1186 = vmatmul.mubr.msk.bf16.vlgmr.msra.gmra.mrb[0].mxu0 %vm236_vm2, %v215_v4  ;;  %v1405_v35 = vld [vmem:[%s202_s10] sm:$0xff] }
  0x12   : > { %1205 = vmatprep.mubr.msk.bf16.mxu0 %vm1311_vm1, %v1310_v1  ;;  %vm214_vm6 = vcmp.gt.f32.partialorder %v1405_v35, 0.0  ;;  %v1287_v35 = vld [vmem:[%s1510_s2 + $0x50] sm:$0xff]  }
  0xe4   : > { %v278_v7 = vpop.f32.mrb[0].mxu0 }
  0xe5   : > { %v279_v8 = vadd.f32 %v1122_v6, %v278_v7  ;;  %v1187_v9 = vpop.f32.mrb[1].mxu0 }
  0xe6   : > { %v281_v10 = vpop.f32.mrb[2].mxu0  ;;  %v1284_v9 = vld [vmem:[%s1510_s2 + $0x30] sm:$0xff]  }
  0xe7   : > { %v284_v12 = vpack.c.bf16 %v279_v8, %v279_v8  ;;  %v1188_v13 = vpop.f32.mrb[3].mxu0  ;;  %v1283_v8 = vld [vmem:[%s1510_s2 + $0x28] sm:$0xff]   ;;  %v1285_v10 = vld [vmem:[%s1510_s2 + $0x38] sm:$0xff]  }
  0xe9   : > { %1192 = vmatmul.mubr.msk.bf16.vlgmr.msra.gmra.mrb[0].mxu1 %vm298_vm3, %v284_v12 }
  0xea   : > { %1196 = vmatpush3.bf16.msra.mxu1 %v1281_v11  ;;  %1199 = vmatprep.mubr.msk.bf16.mxu1 %vm1311_vm1, %v1310_v1 }
  0xeb   : > { %1197 = vmatprep.subr.bf16.mxu1 %v1310_v1 }
  0xee   : > { %1198 = vmatpush3.bf16.msra.mxu1 %v1282_v14 }
  0xef   : > { %1209 = vmatprep.subr.bf16.mxu1 %v1310_v1 }
 0x1bc   : > { %v336_v17 = vpop.f32.mrb[0].mxu1 }
 0x1bd   : > { %v342_v18 = vpack.c.bf16 %v336_v17, %v336_v17  ;;  %v1193_v19 = vpop.f32.mrb[1].mxu1 }
 0x1be   : > { %v339_v20 = vpop.f32.mrb[2].mxu1  ;;  %v1133_v19 = vld [vmem:[%s1511_s3 + $0x8] ss:$0 sm:$0xff] }
 0x1bf   : > { %v1194_v21 = vpop.f32.mrb[3].mxu1  ;;  %1200 = vmatmul.mubr.msk.bf16.vlgmr.msra.gmra.mrb[4].mxu1 %vm355_vm4, %v342_v18  ;;  %v464_v22 = vsel %vm463_vm5, %v342_v18, 0 }
 0x1c0   : > { %1204 = vmatpush3.bf16.msra.mxu0 %v464_v22  ;;  %1211 = vmatprep.mubr.msk.bf16.mxu1 %vm1311_vm1, %v1310_v1 }
 0x1c1   : > { %1215 = vmatprep.subr.bf16.mxu0 %v1310_v1 }
 0x292   : > { %v393_v23 = vpop.f32.mrb[4].mxu1 }
 0x293   : > { %433 = vperm.xlu1 %1275, %v393_v23   ;;  %507 = vperm.xlu0 %1274, %v393_v23   ;;  %v1201_v24 = vpop.f32.mrb[5].mxu1 }
 0x294   : > { %v396_v25 = vpop.f32.mrb[6].mxu1  ;;  %v1316_v24 = vmov 1  }
 0x295   : > { %v1202_v26 = vpop.f32.mrb[7].mxu1 }
 0x297   : > { %1276 = vset.pattern.permute.xlu1 %v1316_v24 }
 0x2b1   : > { %399 = vxpose.xlu0.b32.start.end [1/1] (short) (narrow) %v393_v23, 8 }
 0x312   : > { %v508_v29 = vpop.permute.xlu0 %507  ;;  %v434_v36 = vpop.permute.xlu1 %433 }
 0x331   : > { %v415_v32 = vpop.trf.xlu0 }
 0x332   : > { %v439_v33 = vrot.slane %v415_v32, %v438_v30  ;;  %v513_v34 = vrot.slane %v415_v32, %v512_v31 }
 0x334   : > { %v440_v37 = vadd.f32 %v439_v33, %v434_v36  ;;  %v514_v38 = vadd.f32 %v513_v34, %v508_v29 }
 0x336   : > { %vm515_vm7 = vcmp.ge.f32.partialorder %v514_v38, 0.0  ;;  %v516_v39 = vmul.f32 0.2, %v514_v38  ;;  %vm441_vm8 = vcmp.ge.f32.partialorder %v440_v37, 0.0  ;;  %v442_v40 = vmul.f32 0.2, %v440_v37 }
 0x338   : > { %v517_v41 = vsel %vm515_vm7, %v514_v38, %v516_v39  ;;  %v443_v42 = vsel %vm441_vm8, %v440_v37, %v442_v40 }
 0x339   : > { %v518_v43 = vsel %vm214_vm6, %v517_v41, -1e+30  ;;  %v444_v44 = vsel %vm214_vm6, %v443_v42, -1e+30 }
 0x33a   : > { %v519_v45 = vsel %vm445_vm9, %v518_v43, -inf  ;;  %v446_v46 = vsel %vm445_vm9, %v444_v44, -inf }
 0x33b   : > { %520 = vmax.xlane.f32.xlu1 %v519_v45  ;;  %447 = vmax.xlane.f32.xlu0 %v446_v46 }
 0x3c8   : > { %v521_v47 = vpop.xlane.xlu1 %520  ;;  %v448_v53 = vpop.xlane.xlu0 %447 }
 0x3c9   : > { %v522_v48 = vsub.f32 %v518_v43, %v521_v47  ;;  %v449_v54 = vsub.f32 %v444_v44, %v448_v53 }
 0x3cb   : > { %v523_v49 = vmul.f32 1.442695, %v522_v48  ;;  %v450_v55 = vmul.f32 1.442695, %v449_v54 }
 0x3cd   : > { %1290 = vpow2.f32 %v523_v49 }
 0x3ce   : > { %1292 = vpow2.f32 %v450_v55  ;;  %v1286_v55 = vld [vmem:[%s1510_s2 + $0x40] sm:$0xff]  }
 0x3d7   : > { %v1291_v50 = vpop.eup %1290 }
 0x3d8   : > { %v525_v51 = vsel %vm214_vm6, %v1291_v50, 0.0  ;;  %v1293_v56 = vpop.eup %1292 }
 0x3d9   : > { %v526_v52 = vsel %vm445_vm9, %v525_v51, 0.0  ;;  %v452_v57 = vsel %vm214_vm6, %v1293_v56, 0.0  ;;  %v1139_v56 = vld [vmem:[%s1511_s3 + $0x10] ss:$0 sm:$0xff] }
 0x3da   : > { %527 = vadd.xlane.f32.xlu1 %v526_v52  ;;  %v453_v58 = vsel %vm445_vm9, %v452_v57, 0.0 }
 0x3eb   : > { %534 = vrot.lane.b32.xlu1 %v342_v18, %s1314_s11  ;;  %s1153_s11 = sshll.u32 %s1514_s16, 4 }
 0x3ec   : > { %s211_s18 = scalar_lea.vmem %s1512_s4, %s1153_s11 }
 0x40f   : > { %454 = vadd.xlane.f32.xlu1 %v453_v58 }
 0x467   : > { %v528_v59 = vpop.xlane.xlu1 %527 }
 0x468   : > { %v529_v60 = vmax.f32 %v528_v59, 1e-20 }
 0x46a   : > { %1294 = vrcp.f32 %v529_v60 }
 0x46b   : > { %v535_v61 = vpop.permute.xlu1 %534 }
 0x46c   : > { %v540_v62 = vsel %vm463_vm5, %v535_v61, 0 }
 0x46d   : > { %1210 = vmatpush3.bf16.msra.mxu1 %v540_v62 }
 0x46e   : > { %1223 = vmatprep.subr.bf16.mxu1 %v1310_v1 }
 0x474   : > { %v1295_v63 = vpop.eup %1294 }
 0x475   : > { %v531_v0 = vmul.f32 %v1295_v63, %v525_v51 }
 0x477   : > { %v532_v2 = vpack.c.bf16 %v531_v0, %v531_v0 }
 0x479   : > { %1212 = vmatmul.mubr.msk.bf16.vlgmr.msra.gmra.mrb[8].mxu1 %vm445_vm9, %v532_v2 }
 0x47a   : > { %1225 = vmatprep.mubr.msk.bf16.mxu1 %vm1311_vm1, %v1310_v1  ;;  %1224 = vmatpush3.bf16.msra.mxu1 %v1285_v10  ;;  %v1289_v10 = vld [vmem:[%s1510_s2 + $0x58] sm:$0xff]  }
 0x47b   : > { %1235 = vmatprep.subr.bf16.mxu1 %v1310_v1 }
 0x49c   : > { %v455_v3 = vpop.xlane.xlu1 %454 }
 0x49d   : > { %v456_v4 = vmax.f32 %v455_v3, 1e-20 }
 0x49f   : > { %1296 = vrcp.f32 %v456_v4 }
 0x4a9   : > { %v1297_v5 = vpop.eup %1296 }
 0x4aa   : > { %v458_v6 = vmul.f32 %v1297_v5, %v452_v57 }
 0x4ac   : > { %v459_v7 = vpack.c.bf16 %v458_v6, %v458_v6 }
 0x4ae   : > { %1206 = vmatmul.mubr.msk.bf16.vlgmr.msra.gmra.mrb[4].mxu0 %vm445_vm9, %v459_v7 }
 0x4af   : > { %1219 = vmatprep.mubr.msk.bf16.mxu0 %vm1311_vm1, %v1310_v1  ;;  %1216 = vmatpush3.bf16.msra.mxu0 %v1283_v8 }
 0x4b0   : > { %1217 = vmatprep.subr.bf16.mxu0 %v1310_v1 }
 0x4b3   : > { %1218 = vmatpush3.bf16.msra.mxu0 %v1284_v9  ;;  %v1288_v9 = vld [vmem:[%s1510_s2 + $0x48] sm:$0xff]  }
 0x4b4   : > { %1229 = vmatprep.subr.bf16.mxu0 %v1310_v1 }
 0x54c   : > { %v576_v11 = vpop.f32.mrb[8].mxu1 }
 0x54d   : > { %v1213_v12 = vpop.f32.mrb[9].mxu1  ;;  %583 = vrot.lane.b32.xlu0 %v576_v11, %s1315_s20  ;;  %v1141_v11 = vld [vmem:[%s1511_s3 + $0x18] ss:$0 sm:$0xff] }
 0x54e   : > { %v579_v13 = vpop.f32.mrb[10].mxu1 }
 0x54f   : > { %v1214_v14 = vpop.f32.mrb[11].mxu1 }
 0x581   : > { %v500_v15 = vpop.f32.mrb[4].mxu0 }
 0x582   : > { %v1207_v16 = vpop.f32.mrb[5].mxu0 }
 0x583   : > { %v503_v17 = vpop.f32.mrb[6].mxu0 }
 0x584   : > { %v1208_v18 = vpop.f32.mrb[7].mxu0 }
 0x585   : > { %v883_v18 = vld [vmem:[%s1511_s3 + $0x28] sm:$0x1] }
 0x5bf   : > { %v584_v20 = vpop.permute.xlu0 %583 }
 0x5c0   : > { %v586_v21 = vsel %vm298_vm3, %v500_v15, %v584_v20 }
 0x5c1   : > { %v591_v22 = vadd.f32 %v1133_v19, %v586_v21 }
 0x5c3   : > { %v592_v23 = vpack.c.bf16 %v591_v22, %v591_v22 }
 0x5c5   : > { %1220 = vmatmul.mubr.msk.bf16.vlgmr.msra.gmra.mrb[8].mxu0 %vm355_vm4, %v592_v23 }
 0x5c6   : > { %1231 = vmatprep.mubr.msk.bf16.mxu0 %vm1311_vm1, %v1310_v1 }
 0x698   : > { %v649_v25 = vpop.f32.mrb[8].mxu0 }
 0x699   : > { %v655_v26 = vpack.c.bf16 %v649_v25, %v649_v25  ;;  %v1221_v27 = vpop.f32.mrb[9].mxu0 }
 0x69a   : > { %v652_v29 = vpop.f32.mrb[10].mxu0 }
 0x69b   : > { %v772_v31 = vsel %vm463_vm5, %v655_v26, 0  ;;  %v1222_v32 = vpop.f32.mrb[11].mxu0  ;;  %1226 = vmatmul.mubr.msk.bf16.vlgmr.msra.gmra.mrb[12].mxu1 %vm298_vm3, %v655_v26  ;;  %v1146_v26 = vld [vmem:[%s1511_s3 + $0x20] ss:$0 sm:$0xff] }
 0x69c   : > { %1230 = vmatpush3.bf16.msra.mxu0 %v772_v31  ;;  %1237 = vmatprep.mubr.msk.bf16.mxu1 %vm1311_vm1, %v1310_v1 }
 0x69d   : > { %1241 = vmatprep.subr.bf16.mxu0 %v1310_v1  ;;  %1236 = vmatpush3.bf16.msra.mxu1 %v1286_v55 }
 0x69e   : > { %1247 = vmatprep.subr.bf16.mxu1 %v1310_v1 }
 0x76e   : > { %v699_v33 = vpop.f32.mrb[12].mxu1 }
 0x76f   : > { %705 = vxpose.xlu0.b32.start.end [1/1] (short) (narrow) %v699_v33, 8  ;;  %739 = vperm.xlu1 %1276, %v699_v33   ;;  %v1227_v34 = vpop.f32.mrb[13].mxu1 }
 0x770   : > { %v702_v36 = vpop.f32.mrb[14].mxu1  ;;  %v994_v34 = vld [vmem:[%s1511_s3 + $0x30] sm:$0x1] }
 0x771   : > { %v1228_v37 = vpop.f32.mrb[15].mxu1 }
 0x798   : > { %1277 = vset.pattern.permute.xlu0 %v1316_v24 }
 0x7ee   : > { %v740_v40 = vpop.permute.xlu1 %739 }
 0x7ef   : > { %v721_v38 = vpop.trf.xlu0 }
 0x7f0   : > { %v745_v39 = vrot.slane %v721_v38, %v438_v30 }
 0x7f2   : > { %v746_v41 = vadd.f32 %v745_v39, %v740_v40 }
 0x7f4   : > { %vm747_vm10 = vcmp.ge.f32.partialorder %v746_v41, 0.0  ;;  %v748_v42 = vmul.f32 0.2, %v746_v41 }
 0x7f6   : > { %v749_v43 = vsel %vm747_vm10, %v746_v41, %v748_v42 }
 0x7f7   : > { %v750_v44 = vsel %vm214_vm6, %v749_v43, -1e+30 }
 0x7f8   : > { %v751_v45 = vsel %vm445_vm9, %v750_v44, -inf }
 0x7f9   : > { %752 = vmax.xlane.f32.xlu1 %v751_v45 }
 0x886   : > { %v753_v46 = vpop.xlane.xlu1 %752 }
 0x887   : > { %v754_v47 = vsub.f32 %v750_v44, %v753_v46 }
 0x889   : > { %v755_v48 = vmul.f32 1.442695, %v754_v47 }
 0x88b   : > { %1298 = vpow2.f32 %v755_v48 }
 0x895   : > { %v1299_v49 = vpop.eup %1298 }
 0x896   : > { %v757_v28 = vsel %vm214_vm6, %v1299_v49, 0.0 }
 0x897   : > { %v758_v30 = vsel %vm445_vm9, %v757_v28, 0.0 }
 0x898   : > { %759 = vadd.xlane.f32.xlu0 %v758_v30 }
 0x925   : > { %v760_v50 = vpop.xlane.xlu0 %759 }
 0x926   : > { %v761_v51 = vmax.f32 %v760_v50, 1e-20 }
 0x928   : > { %1300 = vrcp.f32 %v761_v51 }
 0x932   : > { %v1301_v52 = vpop.eup %1300 }
 0x933   : > { %v763_v53 = vmul.f32 %v1301_v52, %v757_v28 }
 0x935   : > { %v764_v54 = vpack.c.bf16 %v763_v53, %v763_v53 }
 0x937   : > { %1232 = vmatmul.mubr.msk.bf16.vlgmr.msra.gmra.mrb[12].mxu0 %vm445_vm9, %v764_v54 }
 0x938   : > { %1243 = vmatprep.mubr.msk.bf16.mxu0 %vm1311_vm1, %v1310_v1  ;;  %1242 = vmatpush3.bf16.msra.mxu0 %v1287_v35 }
 0x939   : > { %1253 = vmatprep.subr.bf16.mxu0 %v1310_v1 }
 0xa0a   : > { %v808_v57 = vpop.f32.mrb[12].mxu0 }
 0xa0b   : > { %v809_v58 = vadd.f32 %v1139_v56, %v808_v57  ;;  %v1233_v59 = vpop.f32.mrb[13].mxu0 }
 0xa0c   : > { %v811_v60 = vpop.f32.mrb[14].mxu0 }
 0xa0d   : > { %v814_v61 = vsel %vm298_vm3, %v809_v58, 0.0  ;;  %v822_v62 = vpack.c.bf16 %v809_v58, %v809_v58  ;;  %v1234_v63 = vpop.f32.mrb[15].mxu0 }
 0xa0e   : > { %v815_v0 = vrot.slane %v814_v61, 4 }
 0xa0f   : > { %1238 = vmatmul.mubr.msk.bf16.vlgmr.msra.gmra.mrb[16].mxu1 %vm298_vm3, %v822_v62 }
 0xa10   : > { %v816_v2 = vadd.f32 %v815_v0, %v814_v61  ;;  %1249 = vmatprep.mubr.msk.bf16.mxu1 %vm1311_vm1, %v1310_v1  ;;  %1248 = vmatpush3.bf16.msra.mxu1 %v1288_v9 }
 0xa12   : > { %v817_v3 = vrot.slane %v816_v2, 2 }
 0xa14   : > { %v818_v4 = vadd.f32 %v817_v3, %v816_v2 }
 0xa16   : > { %v819_v5 = vrot.slane %v818_v4, 1 }
 0xa18   : > { %v820_v6 = vadd.f32 %v819_v5, %v818_v4 }
 0xa1a   : > { %v821_v7 = vmul.f32 0.125, %v820_v6 }
 0xa1c   : > { %v823_v8 = vpack.c.bf16 %v821_v7, %v821_v7 }
 0xa1e   : > { %1244 = vmatmul.mubr.msk.bf16.vlgmr.msra.gmra.mrb[16].mxu0 %vm298_vm3, %v823_v8 }
 0xa1f   : > { %1255 = vmatprep.mubr.msk.bf16.mxu0 %vm1311_vm1, %v1310_v1  ;;  %1254 = vmatpush3.bf16.msra.mxu0 %v1289_v10 }
 0xae2   : > { %v874_v12 = vpop.f32.mrb[16].mxu1 }
 0xae3   : > { %v875_v13 = vadd.f32 %v1141_v11, %v874_v12  ;;  %v1239_v14 = vpop.f32.mrb[17].mxu1 }
 0xae4   : > { %v877_v15 = vpop.f32.mrb[18].mxu1 }
 0xae5   : > { %v880_v1 = vmax.f32 %v875_v13, 0.0  ;;  %v1240_v16 = vpop.f32.mrb[19].mxu1 }
 0xae7   : > { %v934_v17 = vpack.c.bf16 %v880_v1, %v880_v1 }
 0xae9   : > { %1250 = vmatmul.mubr.msk.bf16.vlgmr.msra.gmra.mrb[20].mxu1 %vm298_vm3, %v934_v17 }
 0xaf1   : > { %v927_v19 = vpop.f32.mrb[16].mxu0 }
 0xaf2   : > { %v928_v20 = vadd.f32 %v927_v19, %v883_v18  ;;  %v1245_v21 = vpop.f32.mrb[17].mxu0 }
 0xaf3   : > { %v930_v22 = vpop.f32.mrb[18].mxu0 }
 0xaf4   : > { %v933_v23 = vmax.f32 %v928_v20, 0.0  ;;  %v1246_v24 = vpop.f32.mrb[19].mxu0 }
 0xaf6   : > { %v991_v25 = vpack.c.bf16 %v933_v23, %v933_v23 }
 0xaf8   : > { %1256 = vmatmul.mubr.msk.bf16.vlgmr.msra.gmra.mrb[20].mxu0 %vm298_vm3, %v991_v25 }
 0xbbc   : > { %v985_v27 = vpop.f32.mrb[20].mxu1 }
 0xbbd   : > { %v986_v29 = vadd.f32 %v1146_v26, %v985_v27  ;;  %v1251_v31 = vpop.f32.mrb[21].mxu1 }
 0xbbe   : > { %v988_v32 = vpop.f32.mrb[22].mxu1 }
 0xbbf   : > { %1044 = vst [vmem:[%s211_s18] sm:$0xff] %v986_v29  ;;  %v1252_v33 = vpop.f32.mrb[23].mxu1 }
 0xbcb   : > { %v1038_v36 = vpop.f32.mrb[20].mxu0 }
 0xbcc   : > { %v1039_v37 = vadd.f32 %v1038_v36, %v994_v34  ;;  %v1257_v38 = vpop.f32.mrb[21].mxu0 }
 0xbcd   : > { %v1041_v39 = vpop.f32.mrb[22].mxu0 }
 0xbce   : > { %1045 = vst [vmem:[%s211_s18 + $0x8] sm:$0x1] %v1039_v37  ;;  %v1258_v40 = vpop.f32.mrb[23].mxu0 }
 0xbcf PF: > { %s14_s15 = sadd.s32 1, %s1308_s15  }
 0xbd0   : > { %p11_p4 = scmp.ge.s32.totalorder %s14_s15, 6  }
 0xbd2   :  { %13 = sbr.rel (!%p11_p4) target bundleno = 1 (0x1), region = 69 }

</bundles_post_ra>
